<compile_context>
chip_gen: v5e
topology: v5e:2x2
jax: 0.10.0
libtpu: 0.0.40
codegen_flags: <defaults>
</compile_context>

<pallas_src>
import numpy as np
import jax
import jax.numpy as jnp
from jax.experimental import pallas as pl
from jax.experimental.pallas import tpu as pltpu

NUM_QUBITS = 2
PULSE_ARRAY = (3, 2)          # pulses per drive channel (len == NUM_QUBITS)
DIM = 2 ** NUM_QUBITS         # statevector dimension
BATCH = 8
LANES = 128                   # TPU lane width
NUM_PLANES = 4                # moduli, arguments, target_re, target_im


# ----------------------------------------------------------------------------
# Parameter initialization (mirrors DynamicsSimulatorLayer.__init__ defaults)
# ----------------------------------------------------------------------------
def init_parameters(pulse_array, seed=0):
    generic_parameters = [
        ("durations", 65.0, 15.0),
        ("moduli", 1.73, 0.7),
        ("arguments", 0.0, np.pi / 4),
        ("sigmas", 80.0, 10.0),
        ("betas", 0.7, 0.1),
        ("phases", 0.0, np.pi / 4),
    ]
    rng = np.random.default_rng(seed)
    params = {}
    for param_name, base_value, span in generic_parameters:
        for i, num_pulses in enumerate(pulse_array):
            direction = np.power(-1.0, np.round(rng.random(num_pulses)))
            noise = span * direction * rng.random(num_pulses)
            params[f"{param_name}_{i}"] = jnp.asarray(
                base_value + noise, dtype=jnp.float32
            )
    return params


# ----------------------------------------------------------------------------
# Pallas kernel: amplitudes + overlap + deferred normalization -> fidelity
# ----------------------------------------------------------------------------
def _fidelity_kernel(packed_ref, fid_ref):
    """packed_ref: [4*DIM, TB]  sublane ranges = (moduli, arguments, t_re, t_im)
       fid_ref   : [1, TB]      lane-dense fidelity row (batch on lanes)."""
    mod = packed_ref[0 * DIM:1 * DIM, :]      # [DIM, TB]
    pha = packed_ref[1 * DIM:2 * DIM, :]      # [DIM, TB]
    tre = packed_ref[2 * DIM:3 * DIM, :]      # [DIM, TB] pre-rotated target (re)
    tim = packed_ref[3 * DIM:4 * DIM, :]      # [DIM, TB] pre-rotated target (im)

    # complex amplitudes from (modulus, argument): EUP sin/cos + VPU muls
    psi_re = mod * jnp.cos(pha)
    psi_im = mod * jnp.sin(pha)

    # per-lane (per batch element) contributions, reduced over the DIM sublanes
    nrm = psi_re * psi_re + psi_im * psi_im          # ||psi||^2 terms
    ovr = tre * psi_re + tim * psi_im                # Re <t'|psi> terms
    ovi = tre * psi_im - tim * psi_re                # Im <t'|psi> terms

    n2 = jnp.sum(nrm, axis=0, keepdims=True)         # [1, TB]
    ore = jnp.sum(ovr, axis=0, keepdims=True)
    oim = jnp.sum(ovi, axis=0, keepdims=True)

    # fidelity = |<t'|psi>|^2 / ||psi||^2, guarded against all-zero (pad) rows.
    # Exact divide (approx reciprocal introduced ~1e-3 relative error).
    fid_ref[...] = (ore * ore + oim * oim) / jnp.maximum(n2, 1e-12)


def _round_up(x, m):
    return -(-x // m) * m


def _decode_and_fold(initial_comps, target_states, params):
    """Decode components and fold the virtual-Z rotation into the targets."""
    B = initial_comps.shape[0]
    initial_comps = initial_comps.astype(jnp.float32)

    # decode [a, b, phase_b, c, phase_c, ...] -> moduli / arguments [B, DIM]
    mod = jnp.concatenate([initial_comps[:, :1], initial_comps[:, 1::2]], axis=1)
    pha = jnp.concatenate(
        [jnp.zeros((B, 1), jnp.float32), initial_comps[:, 2::2]], axis=1
    )

    # fold the virtual-Z frame rotation into the targets:
    #   <t| D |psi> == <D^H t | psi>   (one-time [1, DIM] op in XLA)
    theta = jnp.stack(
        [jnp.sum(params[f"phases_{q}"]) for q in range(NUM_QUBITS)]
    )
    basis = np.arange(DIM)
    bits = np.stack(
        [(basis >> (NUM_QUBITS - 1 - q)) & 1 for q in range(NUM_QUBITS)],
        axis=0,
    ).astype(np.float32)                                    # [num_qubits, DIM]
    diag_phase = -jnp.einsum("q,qd->d", theta, jnp.asarray(bits))
    t_rot = target_states.astype(jnp.complex64) * jnp.exp(-1j * diag_phase)[None, :]
    tre = jnp.real(t_rot).astype(jnp.float32)
    tim = jnp.imag(t_rot).astype(jnp.float32)
    return mod, pha, tre, tim


def dynamics_simulator_forward(initial_comps, target_states, params,
                               batch_tile=8192, small_batch_threshold=0):
    """Forward pass of DynamicsSimulatorLayer (fidelity computation).

    :param initial_comps: [B, 2*DIM - 1] float32,
        [a_1, b_1, phase_b_1, c_1, phase_c_1, ...] per row.
    :param target_states: [B, DIM] complex64 target row statevectors.
    :param params: dict of per-channel pulse parameters (see init_parameters).
    :param batch_tile: max batch elements per grid step (lane-aligned).
    :param small_batch_threshold: if B <= threshold, use a fused pure-JAX path
        instead of the Pallas kernel (lane padding wastes the DMA for tiny B).
        Default 0 so the Pallas kernel is always exercised here.
    :return: [B] float32 fidelities.
    """
    B = initial_comps.shape[0]
    mod, pha, tre, tim = _decode_and_fold(initial_comps, target_states, params)

    if B <= small_batch_threshold:
        # small-batch fast path: fused XLA elementwise + reduce
        psi_re = mod * jnp.cos(pha)
        psi_im = mod * jnp.sin(pha)
        n2 = jnp.sum(psi_re * psi_re + psi_im * psi_im, axis=-1)
        ore = jnp.sum(tre * psi_re + tim * psi_im, axis=-1)
        oim = jnp.sum(tre * psi_im - tim * psi_re, axis=-1)
        return (ore * ore + oim * oim) / jnp.maximum(n2, 1e-12)

    # --- tile selection ------------------------------------------------------
    lanes_needed = _round_up(B, LANES)
    tb = min(_round_up(batch_tile, LANES), lanes_needed)
    if lanes_needed >= 2 * LANES:
        # guarantee >= 2 grid steps so ("parallel",) can shard across the two
        # v7x TensorCores (no-op on v5e/v6e which have a single TC).
        tb = min(tb, _round_up(-(-lanes_needed // 2), LANES))
    b_pad = _round_up(B, tb)

    # --- pack all planes into ONE lane-dense [4*DIM, b_pad] operand ----------
    # single concatenate-of-transposed-slices + pad (no stack/transpose chain)
    packed = jnp.pad(
        jnp.concatenate([mod.T, pha.T, tre.T, tim.T], axis=0),   # [4*DIM, B]
        ((0, 0), (0, b_pad - B)),
    )                                                            # [4*DIM, b_pad]

    cost = pl.CostEstimate(
        flops=int(14 * DIM * b_pad),
        transcendentals=int(2 * DIM * b_pad),
        bytes_accessed=int(4 * (NUM_PLANES * DIM * b_pad + b_pad)),
    )

    fids = pl.pallas_call(
        _fidelity_kernel,
        out_shape=jax.ShapeDtypeStruct((1, b_pad), jnp.float32),
        grid=(b_pad // tb,),
        in_specs=[pl.BlockSpec((NUM_PLANES * DIM, tb), lambda i: (0, i))],
        out_specs=pl.BlockSpec((1, tb), lambda i: (0, i)),
        compiler_params=pltpu.CompilerParams(
            dimension_semantics=("parallel",)
        ),
        cost_estimate=cost,
    )(packed)

    return fids[0, :B]


# ----------------------------------------------------------------------------
# Pure-JAX reference (original, un-folded formulation) for a sanity check
# ----------------------------------------------------------------------------
def _reference(initial_comps, target_states, params):
    B = initial_comps.shape[0]
    mod = jnp.concatenate([initial_comps[:, :1], initial_comps[:, 1::2]], axis=1)
    pha = jnp.concatenate(
        [jnp.zeros((B, 1), jnp.float32), initial_comps[:, 2::2]], axis=1
    )
    psi = mod * jnp.exp(1j * pha.astype(jnp.complex64))
    psi = psi / jnp.linalg.norm(psi, axis=-1, keepdims=True)
    theta = jnp.stack(
        [jnp.sum(params[f"phases_{q}"]) for q in range(NUM_QUBITS)]
    )
    basis = np.arange(DIM)
    bits = np.stack(
        [(basis >> (NUM_QUBITS - 1 - q)) & 1 for q in range(NUM_QUBITS)], axis=0
    ).astype(np.float32)
    diag = jnp.exp(-1j * jnp.einsum("q,qd->d", theta, jnp.asarray(bits)))
    psi = psi * diag[None, :]
    ov = jnp.sum(jnp.conj(target_states) * psi, axis=-1)
    return jnp.abs(ov) ** 2


if __name__ == "__main__":
    params = init_parameters(PULSE_ARRAY, seed=0)

    key = jax.random.PRNGKey(0)
    k1, k2, k3, k4, k5 = jax.random.split(key, 5)

    # initial_comps: [a_1, b_1, phase_b_1, c_1, phase_c_1, ...] per row
    a0 = jax.random.uniform(k1, (BATCH, 1), minval=0.1, maxval=1.0)
    mods = jax.random.uniform(k2, (BATCH, DIM - 1), minval=0.1, maxval=1.0)
    phas = jax.random.uniform(k3, (BATCH, DIM - 1), minval=-np.pi, maxval=np.pi)
    interleaved = jnp.stack([mods, phas], axis=-1).reshape(BATCH, 2 * (DIM - 1))
    initial_comps = jnp.concatenate([a0, interleaved], axis=1).astype(jnp.float32)

    # target_states: random normalized complex row statevectors
    t_re = jax.random.normal(k4, (BATCH, DIM))
    t_im = jax.random.normal(k5, (BATCH, DIM))
    target_states = (t_re + 1j * t_im).astype(jnp.complex64)
    target_states = target_states / jnp.linalg.norm(
        target_states, axis=-1, keepdims=True
    )

    fids = dynamics_simulator_forward(initial_comps, target_states, params)
    fids = jax.block_until_ready(fids)

    ref = _reference(initial_comps, target_states, params)
    np.testing.assert_allclose(np.asarray(fids), np.asarray(ref),
                               rtol=2e-3, atol=1e-4)
    print("KERNEL_OK")
</pallas_src>

<mosaic_0001>
module attributes {stable_mosaic.version = 11 : i64} {
  func.func @_fidelity_kernel(%arg0: i32, %arg1: memref<16x128xf32, #tpu.memory_space<vmem>>, %arg2: memref<1x128xf32, #tpu.memory_space<vmem>>) attributes {dimension_semantics = [#tpu.dimension_semantics<parallel>], iteration_bounds = array<i64: 1>, scalar_prefetch = 0 : i64, scratch_operands = 0 : i64, tpu.core_type = #tpu.core_type<tc>, window_params = [{transform_indices = @transform_0, window_bounds = array<i64: 16, 128>}, {transform_indices = @transform_1, window_bounds = array<i64: 1, 128>}]} {
    %c0 = arith.constant 0 : index
    %c0_0 = arith.constant 0 : index
    %0 = vector.load %arg1[%c0, %c0_0] : memref<16x128xf32, #tpu.memory_space<vmem>>, vector<4x128xf32>
    %c4 = arith.constant 4 : index
    %c0_1 = arith.constant 0 : index
    %1 = vector.load %arg1[%c4, %c0_1] : memref<16x128xf32, #tpu.memory_space<vmem>>, vector<4x128xf32>
    %c8 = arith.constant 8 : index
    %c0_2 = arith.constant 0 : index
    %2 = vector.load %arg1[%c8, %c0_2] : memref<16x128xf32, #tpu.memory_space<vmem>>, vector<4x128xf32>
    %c12 = arith.constant 12 : index
    %c0_3 = arith.constant 0 : index
    %3 = vector.load %arg1[%c12, %c0_3] : memref<16x128xf32, #tpu.memory_space<vmem>>, vector<4x128xf32>
    %4 = math.cos %1 : vector<4x128xf32>
    %5 = arith.mulf %0, %4 : vector<4x128xf32>
    %6 = math.sin %1 : vector<4x128xf32>
    %7 = arith.mulf %0, %6 : vector<4x128xf32>
    %8 = arith.mulf %5, %5 : vector<4x128xf32>
    %9 = arith.mulf %7, %7 : vector<4x128xf32>
    %10 = arith.addf %8, %9 : vector<4x128xf32>
    %11 = arith.mulf %2, %5 : vector<4x128xf32>
    %12 = arith.mulf %3, %7 : vector<4x128xf32>
    %13 = arith.addf %11, %12 : vector<4x128xf32>
    %14 = arith.mulf %2, %7 : vector<4x128xf32>
    %15 = arith.mulf %3, %5 : vector<4x128xf32>
    %16 = arith.subf %14, %15 : vector<4x128xf32>
    %cst = arith.constant dense<0.000000e+00> : vector<128xf32>
    %17 = vector.multi_reduction <add>, %10, %cst [0] : vector<4x128xf32> to vector<128xf32>
    %18 = vector.shape_cast %17 : vector<128xf32> to vector<1x128xf32>
    %cst_4 = arith.constant dense<0.000000e+00> : vector<128xf32>
    %19 = vector.multi_reduction <add>, %13, %cst_4 [0] : vector<4x128xf32> to vector<128xf32>
    %20 = vector.shape_cast %19 : vector<128xf32> to vector<1x128xf32>
    %cst_5 = arith.constant dense<0.000000e+00> : vector<128xf32>
    %21 = vector.multi_reduction <add>, %16, %cst_5 [0] : vector<4x128xf32> to vector<128xf32>
    %22 = vector.shape_cast %21 : vector<128xf32> to vector<1x128xf32>
    %23 = arith.mulf %20, %20 : vector<1x128xf32>
    %24 = arith.mulf %22, %22 : vector<1x128xf32>
    %25 = arith.addf %23, %24 : vector<1x128xf32>
    %cst_6 = arith.constant 9.99999996E-13 : f32
    %26 = vector.broadcast %cst_6 : f32 to vector<1x128xf32>
    %27 = arith.maximumf %18, %26 : vector<1x128xf32>
    %28 = arith.divf %25, %27 : vector<1x128xf32>
    %c0_7 = arith.constant 0 : index
    %c0_8 = arith.constant 0 : index
    %29 = vector.load %arg2[%c0_7, %c0_8] : memref<1x128xf32, #tpu.memory_space<vmem>>, vector<1x128xf32>
    tpu.vector_store %arg2[%c0_7, %c0_8], %28 {strides = array<i32>} : memref<1x128xf32, #tpu.memory_space<vmem>>, vector<1x128xf32>,
    return
  }
  func.func @transform_0(%arg0: i32) -> (i32, i32) {
    %c0_i32 = arith.constant 0 : i32
    %c0_i32_0 = arith.constant 0 : i32
    return %c0_i32, %arg0 : i32, i32
  }
  func.func @transform_1(%arg0: i32) -> (i32, i32) {
    %c0_i32 = arith.constant 0 : i32
    %c0_i32_0 = arith.constant 0 : i32
    return %c0_i32, %arg0 : i32, i32
  }
}

</mosaic_0001>

<bundles_post_ra>
// kernel: tpu_custom_call.1
= control target key start
LH: loop header
LB: loop body
LE: loop exit
PB: predicated region body
PF: predicated region fallthrough
CT: control target
= control target key end

     0   :  { %6 = vsyncpa [#allocation3], 0  ;;  %s552_s0 = inlined_call_operand.hbm [shape: f32[16,128], index: 0, kind: input, shape index: {}]   ;;  %s553_s1 = inlined_call_operand.hbm [shape: f32[1,128], index: 1, kind: output, shape index: {}]  }
   0x1   :  { %7 = vsyncpa [#allocation4], 0  ;;  %s12_s8 = sshll.u32 %s552_s0, 4  ;;  %s479_s9 = smov [#allocation2]   ;;  %s13_s8 = int_to_ptr.hbm [resolvable:$true] %s12_s8 }
   0x2   :  { %s14_s10 = sshll.u32 %s479_s9, 4  ;;  %s480_s11 = smov 128   ;;  %s15_s10 = int_to_ptr.vmem [resolvable:$true] %s14_s10 }
   0x3   :  { %s481_s12 = smov 8  }
   0x4   :  { %20 = dma.hbm_to_vmem [thread:$0]  %s13_s8, 256, %s15_s10, [#allocation3], %s480_s11, %s480_s11, %s481_s12  }
   0x5   :  { %475 = dma.done.wait [#allocation3], 256  }
   0x6   :  { %476 = vsyncadd [#allocation3], 4294967040  ;;  %v503_v0 = vld [vmem:[#allocation2 + $0x4] sm:$0xf]  ;;  %v482_v12 = vmov 683565275  }
   0x7   :  { %v32_v1 = vand.u32 2139095040, %v503_v0  ;;  %v29_v3 = vand.u32 2147483647, %v503_v0  ;;  %v483_v14 = vmov 2475754826   ;;  %vm31_vm12 = vcmp.lt.s32.totalorder %v503_v0, 0 }
   0x8   :  { %v484_v16 = vmov 2131351028   ;;  %v485_v18 = vmov 2102212464   ;;  %v486_v20 = vmov 920167782  }
   0x9   :  { %v33_v2 = vshrl.u32 %v32_v1, 23  ;;  %v36_v6 = vand.u32 8388607, %v29_v3  ;;  %v487_v26 = vmov 1326507024   ;;  %v488_v1 = vmov 0  }
   0xa   :  { %vm30_vm13 = vcmp.le.f32.partialorder %v29_v3, 0.7853982  ;;  %s489_s0 = smov [#allocation5]   ;;  %s398_s16 = sshll.u32 %s553_s1, 4  ;;  %s399_s16 = int_to_ptr.hbm [resolvable:$true] %s398_s16 }
   0xb   :  { %v408_v4 = vadd.s32 4294967169, %v33_v2  ;;  %v37_v9 = vor.u32 8388608, %v36_v6  ;;  %s396_s13 = sshll.u32 %s489_s0, 4  ;;  %s397_s13 = int_to_ptr.vmem [resolvable:$true] %s396_s13 }
   0xd   :  { %v39_v5 = vadd.s32 1, %v408_v4  ;;  %v512_v28 = vshll.u32 %v37_v9, 8 }
   0xf   :  { %vm40_vm0 = vcmp.gt.s32.totalorder %v39_v5, 0  ;;  %v78_v40 = vand.u32 65535, %v512_v28  ;;  %v79_v41 = vshrl.u32 %v512_v28, 16 }
  0x10   :  { %v41_v7 = vsel %vm40_vm0, %v39_v5, 0 }
  0x11   :  { %v43_v8 = vand.u32 31, %v41_v7  ;;  %v509_v10 = vshrl.u32 %v41_v7, 5 }
  0x13   :  { %v44_v11 = vsub.s32 32, %v43_v8  ;;  %v46_v13 = vshll.u32 %v482_v12, %v43_v8  ;;  %v49_v15 = vshll.u32 %v483_v14, %v43_v8  ;;  %v52_v17 = vshll.u32 %v484_v16, %v43_v8 }
  0x14   :  { %v55_v19 = vshll.u32 %v485_v18, %v43_v8  ;;  %v58_v21 = vshll.u32 %v486_v20, %v43_v8  ;;  %vm61_vm1 = vcmp.lt.s32.totalorder %v509_v10, 1  ;;  %vm64_vm2 = vcmp.lt.s32.totalorder %v509_v10, 4 }
  0x15   :  { %v47_v22 = vshrl.u32 %v483_v14, %v44_v11  ;;  %v50_v23 = vshrl.u32 %v484_v16, %v44_v11  ;;  %v53_v24 = vshrl.u32 %v485_v18, %v44_v11  ;;  %v56_v25 = vshrl.u32 %v486_v20, %v44_v11 }
  0x16   :  { %v59_v27 = vshrl.u32 %v487_v26, %v44_v11  ;;  %vm63_vm3 = vcmp.lt.s32.totalorder %v509_v10, 3  ;;  %vm62_vm4 = vcmp.lt.s32.totalorder %v509_v10, 2  ;;  %v45_v48 = vshrl.u32 %v482_v12, %v44_v11 }
  0x17   :  { %v48_v29 = vor.u32 %v47_v22, %v46_v13  ;;  %v51_v30 = vor.u32 %v50_v23, %v49_v15  ;;  %v54_v31 = vor.u32 %v53_v24, %v52_v17  ;;  %v57_v32 = vor.u32 %v56_v25, %v55_v19 }
  0x18   :  { %v60_v33 = vor.u32 %v59_v27, %v58_v21 }
  0x19   :  { %v69_v34 = vsel %vm61_vm1, %v48_v29, %v51_v30  ;;  %v73_v35 = vsel %vm61_vm1, %v51_v30, %v54_v31  ;;  %v70_v36 = vsel %vm64_vm2, %v57_v32, 920167782  ;;  %v65_v61 = vsel %vm61_vm1, %v45_v48, %v48_v29 }
  0x1a   :  { %v74_v37 = vsel %vm64_vm2, %v60_v33, 1326507024  ;;  %v71_v38 = vsel %vm63_vm3, %v54_v31, %v70_v36  ;;  %v66_v63 = vsel %vm64_vm2, %v54_v31, 2102212464 }
  0x1b   :  { %v75_v39 = vsel %vm63_vm3, %v57_v32, %v74_v37  ;;  %v72_v42 = vsel %vm62_vm4, %v69_v34, %v71_v38  ;;  %v67_v12 = vsel %vm63_vm3, %v51_v30, %v66_v63 }
  0x1c   :  { %v76_v43 = vsel %vm62_vm4, %v73_v35, %v75_v39  ;;  %v102_v46 = vand.u32 65535, %v72_v42  ;;  %v103_v47 = vshrl.u32 %v72_v42, 16  ;;  %v68_v20 = vsel %vm62_vm4, %v65_v61, %v67_v12 }
  0x1d   :  { %v80_v44 = vand.u32 65535, %v76_v43  ;;  %v81_v45 = vshrl.u32 %v76_v43, 16  ;;  %v122_v24 = vmul.u32 %v512_v28, %v68_v20  ;;  %vm172_vm4 = vweird.f32 %v503_v0 }
  0x1e   :  { %v104_v52 = vmul.u32 %v102_v46, %v78_v40  ;;  %v105_v53 = vmul.u32 %v103_v47, %v78_v40  ;;  %v106_v54 = vmul.u32 %v102_v46, %v79_v41  ;;  %v107_v58 = vmul.u32 %v103_v47, %v79_v41 }
  0x1f   :  { %v82_v49 = vmul.u32 %v80_v44, %v78_v40  ;;  %v83_v50 = vmul.u32 %v81_v45, %v78_v40  ;;  %v84_v51 = vmul.u32 %v80_v44, %v79_v41  ;;  %v85_v55 = vmul.u32 %v81_v45, %v79_v41 }
  0x20   :  { %v108_v59 = vshll.u32 %v105_v53, 16  ;;  %v110_v60 = vshll.u32 %v106_v54, 16  ;;  %v109_v9 = vshrl.u32 %v105_v53, 16  ;;  %v111_v16 = vshrl.u32 %v106_v54, 16 }
  0x21   :  { %v86_v56 = vshll.u32 %v83_v50, 16  ;;  %v88_v57 = vshll.u32 %v84_v51, 16  ;;  %v87_v5 = vshrl.u32 %v83_v50, 16  ;;  %v89_v13 = vshrl.u32 %v84_v51, 16 }
  0x22   :  { %vm112_vm6 = vc.u32 %v104_v52, %v108_v59  ;;  %v114_v4 = vadd.s32 %v108_v59, %v104_v52 }
  0x23   :  { %vm90_vm5 = vc.u32 %v82_v49, %v86_v56  ;;  %v92_v62 = vadd.s32 %v86_v56, %v82_v49  ;;  %v113_v7 = vsel %vm112_vm6, 1, %v488_v1 }
  0x24   :  { %v91_v2 = vsel %vm90_vm5, 1, %v488_v1  ;;  %v115_v11 = vadd.s32 %v113_v7, %v107_v58  ;;  %vm116_vm8 = vc.u32 %v114_v4, %v110_v60  ;;  %v118_v19 = vadd.s32 %v114_v4, %v110_v60 }
  0x25   :  { %v93_v6 = vadd.s32 %v91_v2, %v85_v55  ;;  %vm94_vm7 = vc.u32 %v92_v62, %v88_v57  ;;  %v117_v15 = vsel %vm116_vm8, 1, %v488_v1  ;;  %vm349_vm5 = vcmask 1043456  }
  0x26   :  { %v95_v8 = vsel %vm94_vm7, 1, %v488_v1  ;;  %v119_v17 = vadd.s32 %v117_v15, %v115_v11 }
  0x27   :  { %v97_v14 = vadd.s32 %v95_v8, %v93_v6 }
  0x28   :  { %v120_v21 = vadd.s32 %v119_v17, %v109_v9 }
  0x29   :  { %v98_v18 = vadd.s32 %v97_v14, %v87_v5 }
  0x2a   :  { %v121_v23 = vadd.s32 %v120_v21, %v111_v16 }
  0x2b   :  { %v99_v22 = vadd.s32 %v98_v18, %v89_v13  ;;  %v25_v13 = vld [vmem:[#allocation2] sm:$0xf]  ;;  %v27_v18 = vld [vmem:[#allocation2 + $0x8] sm:$0xf] }
  0x2c   :  { %v125_v25 = vadd.s32 1, %v121_v23 }
  0x2d   :  { %vm124_vm9 = vc.u32 %v99_v22, %v118_v19  ;;  %v123_v10 = vadd.s32 %v118_v19, %v99_v22  ;;  %v28_v19 = vld [vmem:[#allocation2 + $0xc] sm:$0xf] }
  0x2e   :  { %v126_v26 = vsel %vm124_vm9, %v125_v25, %v121_v23 }
  0x2f   :  { %v127_v27 = vadd.s32 %v126_v26, %v122_v24 }
  0x31   :  { %v128_v29 = vadd.s32 536870912, %v127_v27 }
  0x33   :  { %v129_v30 = vshrl.u32 %v128_v29, 30 }
  0x35   :  { %v130_v31 = vshll.u32 %v129_v30, 30  ;;  %v153_v48 = vsub.s32 4, %v129_v30 }
  0x37   :  { %v131_v32 = vsub.s32 %v127_v27, %v130_v31  ;;  %v154_v51 = vsel %vm31_vm12, %v153_v48, %v129_v30 }
  0x38   :  { %v156_v54 = vsel %vm30_vm13, 0, %v154_v51 }
  0x39   :  { %vm132_vm10 = vcmp.lt.s32.totalorder %v131_v32, 0  ;;  %v133_v33 = vsub.s32 0, %v131_v32  ;;  %v328_v59 = vadd.s32 3, %v156_v54  ;;  %v173_v1 = vand.u32 3, %v156_v54 }
  0x3b   :  { %v134_v34 = vsel %vm132_vm10, %v133_v33, %v131_v32  ;;  %v329_v2 = vand.u32 3, %v328_v59  ;;  %vm178_vm14 = vcmp.eq.s32.totalorder %v173_v1, 2  ;;  %vm174_vm0 = vcmp.lt.s32.totalorder %v173_v1, 2 }
  0x3c   :  { %v135_v35 = vclz %v134_v34  ;;  %vm175_vm1 = vcmp.eq.s32.totalorder %v173_v1, 0 }
  0x3d   :  { %vm334_vm15 = vcmp.eq.s32.totalorder %v329_v2, 2  ;;  %vm331_vm2 = vcmp.eq.s32.totalorder %v329_v2, 0  ;;  %vm330_vm3 = vcmp.lt.s32.totalorder %v329_v2, 2 }
  0x3e   :  { %v409_v36 = vadd.s32 4294967294, %v135_v35 }
  0x40   :  { %vm410_vm11 = vcmp.lt.s32.totalorder %v409_v36, 0 }
  0x41   :  { %v138_v37 = vsel %vm410_vm11, 0, %v409_v36 }
  0x42   :  { %v139_v38 = vsub.s32 32, %v138_v37  ;;  %v140_v39 = vshll.u32 %v131_v32, %v138_v37  ;;  %v143_v40 = vsub.s32 4294967266, %v138_v37 }
  0x44   :  { %v141_v28 = vshrl.u32 %v123_v10, %v139_v38  ;;  %v144_v41 = vadd.s32 127, %v143_v40 }
  0x46   :  { %v142_v42 = vor.u32 %v141_v28, %v140_v39  ;;  %v145_v43 = vshll.u32 %v144_v41, 23 }
  0x48   :  { %v146_v44 = vor.u32 4788187, %v145_v43  ;;  %v149_v45 = vcvt.s32.f32 %v142_v42 }
  0x4a   :  { %v147_v46 = vand.u32 2147483647, %v146_v44 }
  0x4c   :  { %v150_v47 = vmul.f32 %v149_v45, %v147_v46 }
  0x4e   :  { %v151_v49 = vxor.u32 2147483648, %v150_v47 }
  0x50   :  { %v152_v50 = vsel %vm31_vm12, %v151_v49, %v150_v47 }
  0x51   :  { %v155_v52 = vsel %vm30_vm13, %v503_v0, %v152_v50 }
  0x52   :  { %v157_v53 = vmul.f32 %v155_v52, %v155_v52 }
  0x54   :  { %v158_v55 = vmul.f32 -0.001358992, %v157_v53  ;;  %v165_v56 = vmul.f32 -0.00019511016, %v157_v53 }
  0x56   :  { %v159_v57 = vadd.f32 0.041655596, %v158_v55  ;;  %v166_v58 = vadd.f32 0.008332121, %v165_v56 }
  0x58   :  { %v160_v60 = vmul.f32 %v159_v57, %v157_v53  ;;  %v167_v61 = vmul.f32 %v166_v58, %v157_v53 }
  0x5a   :  { %v161_v62 = vadd.f32 -0.4999988, %v160_v60  ;;  %v168_v63 = vadd.f32 -0.16666654, %v167_v61 }
  0x5c   :  { %v162_v4 = vmul.f32 %v161_v62, %v157_v53  ;;  %v169_v3 = vmul.f32 %v168_v63, %v157_v53 }
  0x5e   :  { %v163_v5 = vadd.f32 1.0, %v162_v4  ;;  %v170_v6 = vadd.f32 1.0, %v169_v3 }
  0x60   :  { %v171_v7 = vmul.f32 %v170_v6, %v155_v52  ;;  %v179_v8 = vxor.u32 2147483648, %v163_v5 }
  0x62   :  { %v176_v9 = vxor.u32 2147483648, %v171_v7  ;;  %v180_v11 = vsel %vm178_vm14, %v179_v8, %v171_v7  ;;  %v336_v12 = vsel %vm334_vm15, %v179_v8, %v171_v7 }
  0x64   :  { %v177_v14 = vsel %vm175_vm1, %v163_v5, %v176_v9  ;;  %v333_v15 = vsel %vm331_vm2, %v163_v5, %v176_v9 }
  0x65   :  { %v181_v16 = vsel %vm174_vm0, %v177_v14, %v180_v11  ;;  %v337_v17 = vsel %vm330_vm3, %v333_v15, %v336_v12 }
  0x66   :  { %v182_v20 = vsel %vm172_vm4, nan, %v181_v16  ;;  %v338_v21 = vsel %vm172_vm4, nan, %v337_v17 }
  0x67   :  { %v183_v22 = vmul.f32 %v182_v20, %v25_v13  ;;  %v339_v23 = vmul.f32 %v338_v21, %v25_v13 }
  0x69   :  { %v340_v24 = vmul.f32 %v183_v22, %v183_v22  ;;  %v341_v25 = vmul.f32 %v339_v23, %v339_v23  ;;  %v343_v26 = vmul.f32 %v183_v22, %v27_v18  ;;  %v344_v27 = vmul.f32 %v339_v23, %v28_v19 }
  0x6a   :  { %v346_v29 = vmul.f32 %v339_v23, %v27_v18  ;;  %v347_v30 = vmul.f32 %v183_v22, %v28_v19 }
  0x6b   :  { %v342_v31 = vadd.f32 %v341_v25, %v340_v24  ;;  %v345_v0 = vadd.f32 %v344_v27, %v343_v26 }
  0x6c   :  { %v348_v32 = vsub.f32 %v346_v29, %v347_v30 }
  0x6d   :  { %v350_v33 = vsel %vm349_vm5, %v342_v31, 0.0  ;;  %v357_v34 = vsel %vm349_vm5, %v345_v0, 0.0 }
  0x6e   :  { %v351_v35 = vrot.slane %v350_v33, 4  ;;  %v358_v36 = vrot.slane %v357_v34, 4  ;;  %v364_v10 = vsel %vm349_vm5, %v348_v32, 0.0 }
  0x6f   :  { %v365_v37 = vrot.slane %v364_v10, 4 }
  0x70   :  { %v352_v38 = vadd.f32 %v351_v35, %v350_v33  ;;  %v359_v39 = vadd.f32 %v358_v36, %v357_v34 }
  0x71   :  { %v366_v40 = vadd.f32 %v365_v37, %v364_v10 }
  0x72   :  { %v353_v28 = vrot.slane %v352_v38, 2  ;;  %v360_v42 = vrot.slane %v359_v39, 2 }
  0x73   :  { %v367_v43 = vrot.slane %v366_v40, 2 }
  0x74   :  { %v354_v41 = vadd.f32 %v353_v28, %v352_v38  ;;  %v361_v46 = vadd.f32 %v360_v42, %v359_v39 }
  0x75   :  { %v368_v47 = vadd.f32 %v367_v43, %v366_v40 }
  0x76   :  { %v355_v44 = vrot.slane %v354_v41, 1  ;;  %v362_v49 = vrot.slane %v361_v46, 1 }
  0x77   :  { %v369_v50 = vrot.slane %v368_v47, 1 }
  0x78   :  { %v356_v45 = vadd.f32 %v355_v44, %v354_v41  ;;  %v363_v51 = vadd.f32 %v362_v49, %v361_v46 }
  0x79   :  { %v370_v52 = vadd.f32 %v369_v50, %v368_v47 }
  0x7a   :  { %v374_v48 = vmax.f32 %v356_v45, 1e-12  ;;  %v371_v55 = vmul.f32 %v363_v51, %v363_v51 }
  0x7b   :  { %v372_v56 = vmul.f32 %v370_v52, %v370_v52 }
  0x7c   :  { %425 = vrcp.f32 %v374_v48  ;;  %v386_v57 = vand.u32 2147483648, %v374_v48  ;;  %vm380_vm6 = vweird.f32 %v374_v48  ;;  %v384_v59 = vand.u32 2147483647, %v374_v48 }
  0x7d   :  { %v373_v62 = vadd.f32 %v372_v56, %v371_v55 }
  0x7e   :  { %v387_v61 = vor.u32 1.1754944e-38, %v386_v57  ;;  %vm385_vm9 = vcmp.eq.f32.partialorder %v384_v59, 8.507059e+37 }
  0x82   :  { %v426_v53 = vpop.eup %425 }
  0x83   :  { %v376_v54 = vmul.f32 %v426_v53, %v374_v48  ;;  %vm381_vm7 = vweird.f32 %v426_v53 }
  0x84   :  { %vm382_vm8 = vmor %vm380_vm6, %vm381_vm7 }
  0x85   :  { %v377_v58 = vsub.f32 1.0, %v376_v54 }
  0x87   :  { %v378_v60 = vmul.f32 %v426_v53, %v377_v58 }
  0x89   :  { %v379_v63 = vadd.f32 %v426_v53, %v378_v60 }
  0x8b   :  { %v383_v1 = vsel %vm382_vm8, %v426_v53, %v379_v63 }
  0x8c   :  { %v388_v2 = vsel %vm385_vm9, %v387_v61, %v383_v1 }
  0x8d   :  { %v389_v4 = vmul.f32 %v388_v2, %v373_v62 }
  0x8f   :  { %390 = vst [vmem:[#allocation5] sm:$0x1] %v389_v4 }
  0x90   :  { %401 = dma.vmem_to_hbm [thread:$0]  %s397_s13, 16, %s399_s16, [#allocation4]  }
  0x91   :  { %477 = dma.done.wait [#allocation4], 16  }
  0x92   :  { %478 = vsyncadd [#allocation4], 4294967280 }
  0x93   :  { %406 = vsyncpa [#allocation3], 1 }
  0x94   :  { %407 = vsyncpa [#allocation4], 1 }

</bundles_post_ra>
